<compile_context>
chip_gen: v7x
topology: tpu7x:2x2x1
jax: 0.10.0
libtpu: 0.0.40
codegen_flags: <defaults>
</compile_context>

<pallas_src>
import functools

import jax
import jax.numpy as jnp
from jax.experimental import pallas as pl
from jax.experimental.pallas import tpu as pltpu


NLP_FIELD_BOOL = (0, 1, 1, 1, 0, 1, 1, 0)   # hardcoded in LR_Layer2.forward
LAMBDA_LLM = 0.1                             # hardcoded in LR_Layer2.forward


def _round_up(x, m):
    return (x + m - 1) // m * m


def fm_kernel(lr_ref, emb_ref, out_ref, *, num_fields, embed_dim):
    # lr_ref : (1, TB)    f32  -- precomputed lr_out per row (LR lookups + 0.1*llm + bias)
    # emb_ref: (TB, Fe*D) native dtype (f32/bf16), lane-dense per sample
    # out_ref: (1, TB)    f32  -- lane-dense final output
    D = embed_dim

    # Per-field fused pass: cast one D-wide chunk at a time (no full (TB, Fe*D) f32 temp),
    # accumulate the field sum `s` and elementwise squares `q` on the VPU.
    x0 = emb_ref[:, 0:D].astype(jnp.float32)                    # (TB, D)
    s = x0
    q = x0 * x0
    for f in range(1, num_fields):
        xf = emb_ref[:, f * D:(f + 1) * D].astype(jnp.float32)  # (TB, D)
        s = s + xf
        q = q + xf * xf

    # Single cross-lane reduce -> per-row scalars laid out along lanes (cheap XLU, with slack).
    dot_sum = 0.5 * jnp.sum(s * s - q, axis=1)                  # (TB,)

    out_ref[...] = dot_sum[None, :] + lr_ref[...]               # (1, TB)


def fm_layer_v22(X, feature_emb, llm_emb_1, lr_tables, bias, *, block_b=4096):
    """X: (B, F) int32; feature_emb: (B, Fe, D) f32/bf16; llm_emb_1: (B, J, 1);
    lr_tables: (F, V) f32 (dim-1 embeddings); bias: (1,) f32. Returns (B, 1) f32."""
    B, F = X.shape
    _, Fe, D = feature_emb.shape
    assert F == len(NLP_FIELD_BOOL)

    # --- LR head (tiny, data-dependent gather): pre-reduce to one scalar per row in JAX.
    # Algebraically identical to the indexed llm adds in the reference, since everything
    # is summed over fields downstream.
    lr_w = lr_tables[jnp.arange(F)[None, :], X].astype(jnp.float32)            # (B, F)
    lr_row = (jnp.sum(lr_w, axis=1)
              + LAMBDA_LLM * jnp.sum(llm_emb_1[..., 0].astype(jnp.float32), axis=1)
              + bias.astype(jnp.float32)[0])                                   # (B,)

    # --- tile sizing: respect the dtype's sublane pack when the tile doesn't cover B.
    itemsize = jnp.dtype(feature_emb.dtype).itemsize
    pack = max(8, 32 // max(itemsize, 1))        # 8 f32, 16 bf16, 32 int8/fp8
    if block_b >= B:
        tb = B                                   # single block == full array dims (always legal)
    else:
        tb = max(pack, (min(block_b, B) // pack) * pack)
    num_tiles = pl.cdiv(B, tb)
    Bp = num_tiles * tb

    # Lane-dense LR row, padded to the tiled extent (pad is tiny; garbage tail rows of the
    # ragged emb tile are computed but sliced off below -- rows are fully independent).
    lr_lane = jnp.pad(lr_row, (0, Bp - B)).reshape(num_tiles, tb)

    # Free, contiguous reshape: native dtype on the wire, lane-dense (Fe*D on lanes).
    emb_flat = feature_emb.reshape(B, Fe * D)

    # --- VMEM budget: double-buffered emb block (lane-padded to 128) + f32 temps + I/O.
    lane_pad = _round_up(Fe * D, 128)
    emb_buf = 2 * tb * lane_pad * itemsize
    tmp_buf = 4 * tb * 128 * 4                   # s, q, current chunk, s*s-q (f32, lane-padded)
    io_buf = 4 * 2 * tb * 4                      # lr in + out, double-buffered, f32
    vmem_limit = int(min(max(1.5 * (emb_buf + tmp_buf + io_buf) + (2 << 20), 16 << 20),
                         64 << 20))              # stays inside v7x's 64 MiB physical VMEM

    kernel = functools.partial(fm_kernel, num_fields=Fe, embed_dim=D)
    out = pl.pallas_call(
        kernel,
        out_shape=jax.ShapeDtypeStruct((num_tiles, tb), jnp.float32),
        grid=(num_tiles,),
        in_specs=[
            pl.BlockSpec((1, tb), lambda i: (i, 0)),          # lr head, lane-dense
            pl.BlockSpec((tb, Fe * D), lambda i: (i, 0)),     # embeddings, lane-dense
        ],
        out_specs=pl.BlockSpec((1, tb), lambda i: (i, 0)),    # lane-dense output (unmasked vst)
        compiler_params=pltpu.CompilerParams(
            dimension_semantics=("parallel",),                # megacore sharding on v7x
            vmem_limit_bytes=vmem_limit,
        ),
    )(lr_lane, emb_flat)

    # Contiguous reshape + slice (fused by XLA, ~0.3% of traffic).
    return out.reshape(Bp)[:B].reshape(B, 1)


def fm_layer_v22_ref(X, feature_emb, llm_emb_1, lr_tables, bias):
    """Pure-JAX reference mirroring the PyTorch forward."""
    F = X.shape[1]
    lr_w = lr_tables[jnp.arange(F)[None, :], X].astype(jnp.float32)            # (B, F)
    idx = jnp.array([f for f, b in enumerate(NLP_FIELD_BOOL) if b])
    lr_w = lr_w.at[:, idx].add(LAMBDA_LLM * llm_emb_1[..., 0].astype(jnp.float32))
    lr_out = jnp.sum(lr_w, axis=1, keepdims=True) + bias[0]
    e = feature_emb.astype(jnp.float32)
    s = jnp.sum(e, axis=1)
    sq = jnp.sum(e * e, axis=1)
    dot_sum = 0.5 * jnp.sum(s * s - sq, axis=-1, keepdims=True)
    return dot_sum + lr_out


if __name__ == "__main__":
    B, F, D, V = 8, 8, 32, 16          # batch, num_fields, embed_dim, vocab per field
    Fe = F + 1                         # InnerProductLayer_v2(num_fields + 1)
    J = sum(NLP_FIELD_BOOL)            # number of NLP fields (= 5)

    key = jax.random.PRNGKey(0)
    kx, ke, kl, kw = jax.random.split(key, 4)

    X = jax.random.randint(kx, (B, F), 0, V, dtype=jnp.int32)
    feature_emb = jax.random.normal(ke, (B, Fe, D), dtype=jnp.float32)
    llm_emb_1 = jax.random.normal(kl, (B, J, 1), dtype=jnp.float32)
    lr_tables = 0.01 * jax.random.normal(kw, (F, V), dtype=jnp.float32)
    bias = jnp.zeros((1,), dtype=jnp.float32)   # nn.Parameter(torch.zeros(1))

    # f32 path (single tile)
    out = fm_layer_v22(X, feature_emb, llm_emb_1, lr_tables, bias)
    jax.block_until_ready(out)
    ref = fm_layer_v22_ref(X, feature_emb, llm_emb_1, lr_tables, bias)
    assert out.shape == (B, 1)
    assert jnp.allclose(out, ref, atol=1e-4, rtol=1e-4)

    # bf16-on-the-wire path (recommended production default: halves the dominant HBM
    # stream; accumulation stays f32 in-kernel so numerics are unchanged).
    emb_bf16 = feature_emb.astype(jnp.bfloat16)
    out_bf16 = fm_layer_v22(X, emb_bf16, llm_emb_1, lr_tables, bias)
    jax.block_until_ready(out_bf16)
    ref_bf16 = fm_layer_v22_ref(X, emb_bf16, llm_emb_1, lr_tables, bias)
    assert jnp.allclose(out_bf16, ref_bf16, atol=1e-3, rtol=1e-3)

    # Multi-tile + ragged-tail path (small block override forces grid > 1).
    B2 = 40
    k2x, k2e, k2l = jax.random.split(jax.random.PRNGKey(0), 3)
    X2 = jax.random.randint(k2x, (B2, F), 0, V, dtype=jnp.int32)
    emb2 = jax.random.normal(k2e, (B2, Fe, D), dtype=jnp.float32)
    llm2 = jax.random.normal(k2l, (B2, J, 1), dtype=jnp.float32)
    out2 = fm_layer_v22(X2, emb2, llm2, lr_tables, bias, block_b=16)
    jax.block_until_ready(out2)
    ref2 = fm_layer_v22_ref(X2, emb2, llm2, lr_tables, bias)
    assert out2.shape == (B2, 1)
    assert jnp.allclose(out2, ref2, atol=1e-4, rtol=1e-4)

    print("KERNEL_OK")
</pallas_src>

<mosaic_0001>
module attributes {stable_mosaic.version = 11 : i64} {
  func.func @fm_kernel(%arg0: i32, %arg1: memref<1x8xf32, #tpu.memory_space<vmem>>, %arg2: memref<8x288xf32, #tpu.memory_space<vmem>>, %arg3: memref<1x8xf32, #tpu.memory_space<vmem>>) attributes {dimension_semantics = [#tpu.dimension_semantics<parallel>], iteration_bounds = array<i64: 1>, scalar_prefetch = 0 : i64, scratch_operands = 0 : i64, tpu.core_type = #tpu.core_type<tc>, window_params = [{transform_indices = @transform_0, window_bounds = array<i64: 1, 8>}, {transform_indices = @transform_1, window_bounds = array<i64: 8, 288>}, {transform_indices = @transform_2, window_bounds = array<i64: 1, 8>}]} {
    %c0 = arith.constant 0 : index
    %c0_0 = arith.constant 0 : index
    %0 = vector.load %arg2[%c0, %c0_0] : memref<8x288xf32, #tpu.memory_space<vmem>>, vector<8x32xf32>
    %1 = arith.mulf %0, %0 : vector<8x32xf32>
    %c0_1 = arith.constant 0 : index
    %c32 = arith.constant 32 : index
    %2 = vector.load %arg2[%c0_1, %c32] : memref<8x288xf32, #tpu.memory_space<vmem>>, vector<8x32xf32>
    %3 = arith.addf %0, %2 : vector<8x32xf32>
    %4 = arith.mulf %2, %2 : vector<8x32xf32>
    %5 = arith.addf %1, %4 : vector<8x32xf32>
    %c0_2 = arith.constant 0 : index
    %c64 = arith.constant 64 : index
    %6 = vector.load %arg2[%c0_2, %c64] : memref<8x288xf32, #tpu.memory_space<vmem>>, vector<8x32xf32>
    %7 = arith.addf %3, %6 : vector<8x32xf32>
    %8 = arith.mulf %6, %6 : vector<8x32xf32>
    %9 = arith.addf %5, %8 : vector<8x32xf32>
    %c0_3 = arith.constant 0 : index
    %c96 = arith.constant 96 : index
    %10 = vector.load %arg2[%c0_3, %c96] : memref<8x288xf32, #tpu.memory_space<vmem>>, vector<8x32xf32>
    %11 = arith.addf %7, %10 : vector<8x32xf32>
    %12 = arith.mulf %10, %10 : vector<8x32xf32>
    %13 = arith.addf %9, %12 : vector<8x32xf32>
    %c0_4 = arith.constant 0 : index
    %c128 = arith.constant 128 : index
    %14 = vector.load %arg2[%c0_4, %c128] : memref<8x288xf32, #tpu.memory_space<vmem>>, vector<8x32xf32>
    %15 = arith.addf %11, %14 : vector<8x32xf32>
    %16 = arith.mulf %14, %14 : vector<8x32xf32>
    %17 = arith.addf %13, %16 : vector<8x32xf32>
    %c0_5 = arith.constant 0 : index
    %c160 = arith.constant 160 : index
    %18 = vector.load %arg2[%c0_5, %c160] : memref<8x288xf32, #tpu.memory_space<vmem>>, vector<8x32xf32>
    %19 = arith.addf %15, %18 : vector<8x32xf32>
    %20 = arith.mulf %18, %18 : vector<8x32xf32>
    %21 = arith.addf %17, %20 : vector<8x32xf32>
    %c0_6 = arith.constant 0 : index
    %c192 = arith.constant 192 : index
    %22 = vector.load %arg2[%c0_6, %c192] : memref<8x288xf32, #tpu.memory_space<vmem>>, vector<8x32xf32>
    %23 = arith.addf %19, %22 : vector<8x32xf32>
    %24 = arith.mulf %22, %22 : vector<8x32xf32>
    %25 = arith.addf %21, %24 : vector<8x32xf32>
    %c0_7 = arith.constant 0 : index
    %c224 = arith.constant 224 : index
    %26 = vector.load %arg2[%c0_7, %c224] : memref<8x288xf32, #tpu.memory_space<vmem>>, vector<8x32xf32>
    %27 = arith.addf %23, %26 : vector<8x32xf32>
    %28 = arith.mulf %26, %26 : vector<8x32xf32>
    %29 = arith.addf %25, %28 : vector<8x32xf32>
    %c0_8 = arith.constant 0 : index
    %c256 = arith.constant 256 : index
    %30 = vector.load %arg2[%c0_8, %c256] : memref<8x288xf32, #tpu.memory_space<vmem>>, vector<8x32xf32>
    %31 = arith.addf %27, %30 : vector<8x32xf32>
    %32 = arith.mulf %30, %30 : vector<8x32xf32>
    %33 = arith.addf %29, %32 : vector<8x32xf32>
    %34 = arith.mulf %31, %31 : vector<8x32xf32>
    %35 = arith.subf %34, %33 : vector<8x32xf32>
    %cst = arith.constant dense<0.000000e+00> : vector<8xf32>
    %36 = vector.multi_reduction <add>, %35, %cst [1] : vector<8x32xf32> to vector<8xf32>
    %cst_9 = arith.constant 5.000000e-01 : f32
    %37 = vector.broadcast %cst_9 : f32 to vector<8xf32>
    %38 = arith.mulf %37, %36 : vector<8xf32>
    %39 = vector.shape_cast %38 : vector<8xf32> to vector<1x8xf32>
    %c0_10 = arith.constant 0 : index
    %c0_11 = arith.constant 0 : index
    %40 = vector.load %arg1[%c0_10, %c0_11] : memref<1x8xf32, #tpu.memory_space<vmem>>, vector<1x8xf32>
    %41 = arith.addf %39, %40 : vector<1x8xf32>
    %c0_12 = arith.constant 0 : index
    %c0_13 = arith.constant 0 : index
    %42 = vector.load %arg3[%c0_12, %c0_13] : memref<1x8xf32, #tpu.memory_space<vmem>>, vector<1x8xf32>
    tpu.vector_store %arg3[%c0_12, %c0_13], %41 {strides = array<i32>} : memref<1x8xf32, #tpu.memory_space<vmem>>, vector<1x8xf32>,
    return
  }
  func.func @transform_0(%arg0: i32) -> (i32, i32) {
    %c0_i32 = arith.constant 0 : i32
    %c0_i32_0 = arith.constant 0 : i32
    return %arg0, %c0_i32 : i32, i32
  }
  func.func @transform_1(%arg0: i32) -> (i32, i32) {
    %c0_i32 = arith.constant 0 : i32
    %c0_i32_0 = arith.constant 0 : i32
    return %arg0, %c0_i32 : i32, i32
  }
  func.func @transform_2(%arg0: i32) -> (i32, i32) {
    %c0_i32 = arith.constant 0 : i32
    %c0_i32_0 = arith.constant 0 : i32
    return %arg0, %c0_i32 : i32, i32
  }
}

</mosaic_0001>

<bundles_post_ra>
// kernel: tpu_custom_call.1
= control target key start
LH: loop header
LB: loop body
LE: loop exit
PB: predicated region body
PF: predicated region fallthrough
CT: control target
= control target key end

     0   :  { %7 = vsyncpa [#allocation3], 0  ;;  %s285_s0 = inlined_call_operand.hbm [shape: f32[1,8], index: 0, kind: input, shape index: {}]   ;;  %s286_s1 = inlined_call_operand.hbm [shape: f32[8,288], index: 1, kind: input, shape index: {}]   ;;  %s287_s2 = inlined_call_operand.hbm [shape: f32[1,8], index: 2, kind: output, shape index: {}]  }
   0x1   :  { %8 = vsyncpa [#allocation6], 0 }
   0x2   :  { %9 = vsyncpa [#allocation4], 0  ;;  %s227_s9 = smov [#allocation2]   ;;  %s228_s11 = smov [#allocation5]  }
   0x3   :  { %s16_s10 = sshll.u32 %s227_s9, 4  ;;  %s26_s12 = sshll.u32 %s228_s11, 4  ;;  %s17_s10 = int_to_ptr.vmem [resolvable:$true] %s16_s10  ;;  %s27_s12 = int_to_ptr.vmem [resolvable:$true] %s26_s12 }
   0x4   :  { %s155_s15 = scalar_lea.hbm %s285_s0, 16 }
   0x5   :  { %p156_p0 = scmp.ne.s32.totalorder %s285_s0, %s155_s15  ;;  %p159_p1 = scmp.lt.u32.totalorder %s155_s15, %s285_s0 }
   0x7   :  { %p161_p2 = pnand %p159_p1, %p156_p0 }
   0x9   :  { %164 = shalt.err (!%p161_p2)
}
   0xa   :  { %s165_s20 = scalar_lea.vmem %s17_s10, 16  ;;  %s169_s21 = scalar_lea.vmem %s17_s10, 32 }
   0xb   :  { %p166_p3 = scmp.ne.s32.totalorder %s17_s10, %s165_s20  ;;  %p170_p4 = scmp.lt.s32.totalorder %s17_s10, %s17_s10 }
   0xc   :  { %p171_p5 = scmp.lt.s32.totalorder %s169_s21, %s165_s20 }
   0xe   :  { %p172_p6 = por %p171_p5, %p170_p4 }
  0x10   :  { %p173_p7 = pnand %p172_p6, %p166_p3 }
  0x12   :  { %176 = shalt.err (!%p173_p7)
}
  0x13   :  { %19 = dma.hbm_to_vmem [thread:$0]  %s285_s0, 16, %s17_s10, [#allocation3]  }
  0x14   :  { %s177_s26 = scalar_lea.hbm %s286_s1, 384 }
  0x15   :  { %p178_p8 = scmp.ne.s32.totalorder %s286_s1, %s177_s26  ;;  %p181_p9 = scmp.lt.u32.totalorder %s177_s26, %s286_s1 }
  0x17   :  { %p183_p10 = pnand %p181_p9, %p178_p8 }
  0x19   :  { %186 = shalt.err (!%p183_p10)
}
  0x1a   :  { %s187_s3 = scalar_lea.vmem %s27_s12, 384  ;;  %p192_p12 = scmp.lt.s32.totalorder %s27_s12, %s27_s12 }
  0x1b   :  { %p188_p11 = scmp.ne.s32.totalorder %s27_s12, %s187_s3  ;;  %p193_p13 = scmp.lt.s32.totalorder %s187_s3, %s187_s3 }
  0x1d   :  { %p194_p0 = por %p193_p13, %p192_p12 }
  0x1f   :  { %p195_p1 = pnand %p194_p0, %p188_p11 }
  0x21   :  { %198 = shalt.err (!%p195_p1)
}
  0x22   :  { %29 = dma.hbm_to_vmem [thread:$0]  %s286_s1, 384, %s27_s12, [#allocation6]  }
  0x23   :  { %221 = dma.done.wait [#allocation3], 16  }
  0x24   :  { %222 = vsyncadd [#allocation3], 4294967280 }
  0x25   :  { %223 = dma.done.wait [#allocation6], 384  }
  0x26   :  { %224 = vsyncadd [#allocation6], 4294966912  ;;  %v36_v0 = vld [vmem:[#allocation5] sm:$0xff]  ;;  %s229_s5 = smov 64   ;;  %s230_s6 = smov 96   ;;  %v64_v2 = vld [vmem:[#allocation5 + $0x8] sm:$0xff]  ;;  %v120_v43 = vlaneseq }
  0x27   :  { %48 = vrot.lane.b32.xlu1 %v36_v0, %s229_s5  ;;  %39 = vrot.lane.b32.xlu0 %v36_v0, %s230_s6  ;;  %v37_v1 = vmul.f32 %v36_v0, %v36_v0  ;;  %s231_s7 = smov 32   ;;  %v66_v3 = vmul.f32 %v64_v2, %v64_v2  ;;  %v145_v4 = vld [vmem:[#allocation2] ss:$0 sm:$0xff]  ;;  %v94_v25 = vld [vmem:[#allocation5 + $0x10] sm:$0xff]  ;;  %vm100_vm0 = vcmask 261120   ;;  %v232_v38 = vmov 0  }
  0x28   :  { %v96_v30 = vmul.f32 %v94_v25, %v94_v25  ;;  %153 = vset.pattern.permute.xlu1 %v232_v38  ;;  %154 = vset.pattern.permute.xlu0 %v232_v38  ;;  %v121_v44 = vand.u32 127, %v120_v43  ;;  %v123_v45 = vshrl.u32 %v120_v43, 7  ;;  %s233_s1 = smov [#allocation7]   ;;  %vm127_vm1 = vcmask 57344  }
  0x29   :  { %s135_s8 = sshll.u32 %s233_s1, 4  ;;  %s136_s8 = int_to_ptr.vmem [resolvable:$true] %s135_s8 }
  0x2a   :  { %v124_v46 = vsub.s32 %v121_v44, %v123_v45  ;;  %s199_s9 = scalar_lea.vmem %s136_s8, 16  ;;  %s203_s10 = scalar_lea.vmem %s136_s8, 32 }
  0x2b   :  { %56 = vrot.lane.b32.xlu0 %v36_v0, %s231_s7  ;;  %52 = vrot.lane.b32.xlu1 %v37_v1, %s229_s5  ;;  %p200_p2 = scmp.ne.s32.totalorder %s136_s8, %s199_s9  ;;  %p204_p3 = scmp.lt.s32.totalorder %s136_s8, %s136_s8 }
  0x2c   :  { %p205_p4 = scmp.lt.s32.totalorder %s203_s10, %s199_s9 }
  0x2e   :  { %p206_p5 = por %p205_p4, %p204_p3 }
  0x2f   :  { %60 = vrot.lane.b32.xlu1 %v37_v1, %s231_s7  ;;  %44 = vrot.lane.b32.xlu0 %v37_v1, %s230_s6 }
  0x30   :  { %p207_p6 = pnand %p206_p5, %p200_p2 }
  0x33   :  { %74 = vrot.lane.b32.xlu1 %v66_v3, %s230_s6  ;;  %69 = vrot.lane.b32.xlu0 %v64_v2, %s230_s6 }
  0x37   :  { %82 = vrot.lane.b32.xlu1 %v66_v3, %s229_s5  ;;  %78 = vrot.lane.b32.xlu0 %v64_v2, %s229_s5 }
  0x3b   :  { %90 = vrot.lane.b32.xlu1 %v66_v3, %s231_s7  ;;  %86 = vrot.lane.b32.xlu0 %v64_v2, %s231_s7 }
  0x3f   :  { %112 = vbcast.lane.b32.xlu1 %v145_v4, 256 }
  0x99   :  { %v49_v5 = vpop.permute.xlu1 %48  ;;  %v40_v6 = vpop.permute.xlu0 %39 }
  0x9a   :  { %v42_v7 = vadd.f32 %v40_v6, %v36_v0 }
  0x9c   :  { %v51_v10 = vadd.f32 %v49_v5, %v42_v7 }
  0x9d   :  { %v57_v8 = vpop.permute.xlu0 %56  ;;  %v53_v9 = vpop.permute.xlu1 %52 }
  0x9e   :  { %v59_v14 = vadd.f32 %v57_v8, %v51_v10 }
  0xa0   :  { %v65_v20 = vadd.f32 %v64_v2, %v59_v14 }
  0xa1   :  { %v61_v11 = vpop.permute.xlu1 %60  ;;  %v45_v12 = vpop.permute.xlu0 %44 }
  0xa2   :  { %v47_v13 = vadd.f32 %v45_v12, %v37_v1 }
  0xa4   :  { %v55_v15 = vadd.f32 %v53_v9, %v47_v13 }
  0xa5   :  { %v75_v16 = vpop.permute.xlu1 %74  ;;  %v70_v17 = vpop.permute.xlu0 %69 }
  0xa6   :  { %v63_v18 = vadd.f32 %v61_v11, %v55_v15  ;;  %v72_v24 = vadd.f32 %v70_v17, %v65_v20 }
  0xa8   :  { %v67_v19 = vadd.f32 %v66_v3, %v63_v18 }
  0xa9   :  { %v83_v21 = vpop.permute.xlu1 %82  ;;  %v79_v22 = vpop.permute.xlu0 %78 }
  0xaa   :  { %v77_v23 = vadd.f32 %v75_v16, %v67_v19  ;;  %v81_v27 = vadd.f32 %v79_v22, %v72_v24 }
  0xac   :  { %v85_v26 = vadd.f32 %v83_v21, %v77_v23 }
  0xad   :  { %v91_v28 = vpop.permute.xlu1 %90  ;;  %v87_v29 = vpop.permute.xlu0 %86 }
  0xae   :  { %v93_v31 = vadd.f32 %v91_v28, %v85_v26  ;;  %v89_v32 = vadd.f32 %v87_v29, %v81_v27 }
  0xb0   :  { %v95_v33 = vadd.f32 %v94_v25, %v89_v32  ;;  %v97_v34 = vadd.f32 %v96_v30, %v93_v31 }
  0xb1   :  { %v113_v40 = vpop.permute.xlu1 %112 }
  0xb2   :  { %v98_v35 = vmul.f32 %v95_v33, %v95_v33 }
  0xb4   :  { %v99_v36 = vsub.f32 %v98_v35, %v97_v34 }
  0xb6   :  { %v101_v37 = vsel %vm100_vm0, %v99_v36, 0.0 }
  0xb7   :  { %102 = vadd.xlane.f32.xlu0 %v101_v37 }
 0x144   :  { %v103_v39 = vpop.xlane.xlu0 %102 }
 0x145   :  { %v104_v41 = vmul.f32 0.5, %v103_v39 }
 0x147   :  { %v115_v42 = vadd.f32 %v113_v40, %v104_v41 }
 0x149   :  { %118 = vperm.xlu1 %153, %v115_v42  }
 0x1c8   :  { %v119_v47 = vpop.permute.xlu1 %118 }
 0x1c9   :  { %v125_v48 = vrot.slane %v119_v47, %v124_v46 }
 0x1cb   :  { %128 = vst.msk [vmem:[#allocation7] sm:$0x1] %vm127_vm1, %v125_v48 }
 0x1cc   :  { %210 = shalt.err (!%p207_p6)
}
 0x1cd   :  { %s211_s13 = scalar_lea.hbm %s287_s2, 16 }
 0x1ce   :  { %p212_p7 = scmp.ne.s32.totalorder %s287_s2, %s211_s13  ;;  %p215_p8 = scmp.lt.u32.totalorder %s211_s13, %s287_s2 }
 0x1d0   :  { %p217_p9 = pnand %p215_p8, %p212_p7 }
 0x1d2   :  { %220 = shalt.err (!%p217_p9)
}
 0x1d3   :  { %138 = dma.vmem_to_hbm [thread:$0]  %s136_s8, 16, %s287_s2, [#allocation4]  }
 0x1d4   :  { %225 = dma.done.wait [#allocation4], 16  }
 0x1d5   :  { %226 = vsyncadd [#allocation4], 4294967280 }
 0x1d6   :  { %142 = vsyncpa [#allocation3], 1 }
 0x1d7   :  { %143 = vsyncpa [#allocation6], 1 }
 0x1d8   :  { %144 = vsyncpa [#allocation4], 1 }

</bundles_post_ra>
